<compile_context>
chip_gen: v7x
topology: tpu7x:2x2x1
jax: 0.10.0
libtpu: 0.0.40
codegen_flags: <defaults>
</compile_context>

<pallas_src>
import functools

import jax
import jax.numpy as jnp
from jax.experimental import pallas as pl
from jax.experimental.pallas import tpu as pltpu


# ---------------------------------------------------------------------------
# Helpers
# ---------------------------------------------------------------------------

def _round_up(x, m):
    return ((x + m - 1) // m) * m if m > 0 else x


def _vmem_capacity_bytes():
    try:
        return int(pltpu.get_tpu_info().vmem_capacity_bytes)
    except Exception:
        return 64 * 1024 * 1024  # conservative default (v7x per-core VMEM)


def _choose_tile_m(m_img, n_batch, c_pad, o_pad, halo_pad, k, out_bytes):
    """Pick the pixel-tile (multiple of 128) from the device VMEM budget."""
    vmem_cap = _vmem_capacity_bytes()
    budget = min(int(vmem_cap * 0.45), 48 * 1024 * 1024)

    def step_bytes(t):
        slab = c_pad * (t + halo_pad) * 2          # bf16 halo'd input slab (1 buffer)
        acc = o_pad * t * 4                        # f32 accumulator scratch
        outb = 2 * o_pad * t * out_bytes           # double-buffered output block
        wgt = 2 * (k * k) * o_pad * c_pad * 2      # (tiny) resident weight block
        return slab + acc + outb + wgt

    m128 = _round_up(m_img, 128)
    cands = [t for t in range(128, min(8192, m128) + 1, 128) if step_bytes(t) <= budget]
    if not cands:
        cands = [128]
    # minimal padded extent first, then the largest tile (fewest grid steps)
    tile = min(cands, key=lambda t: (_round_up(m_img, t), -t))
    # v7x megacore: make sure there are >= 2 "parallel" grid steps.
    if n_batch * (_round_up(m_img, tile) // tile) < 2:
        halves = [t for t in cands if _round_up(m_img, t) // t >= 2]
        if halves:
            tile = min(halves, key=lambda t: (_round_up(m_img, t), -t))
    vmem_limit = max(32 * 1024 * 1024,
                     min(vmem_cap - 16 * 1024 * 1024, 100 * 1024 * 1024))
    return tile, vmem_limit


# ---------------------------------------------------------------------------
# Pallas kernel: fused (convl2l + convl2g), in-kernel im2col from a halo'd slab
# ---------------------------------------------------------------------------

def _fused_conv_kernel(w_ref, x_hbm, o_ref, slab_ref, acc_ref, sem_ref, *,
                       k, wp, tile_m, tile_in):
    n = pl.program_id(0)
    t = pl.program_id(1)
    q = pl.multiple_of(t * tile_m, 128)

    # Halo'd input slab: flat padded-image pixels [q, q+tile_in) of image n, all
    # (padded) input channels.  Streamed HBM -> VMEM here; no im2col matrix
    # ever touches HBM.
    cp = pltpu.make_async_copy(x_hbm.at[n, :, pl.ds(q, tile_in)], slab_ref, sem_ref)
    cp.start()
    cp.wait()

    acc_ref[...] = jnp.zeros_like(acc_ref)
    # In the flat (row-major, padded-width) pixel space every conv tap is a
    # constant offset di*Wp + dj, so the k*k taps are shifted VMEM slices of
    # the same slab -> k*k small MXU matmuls accumulated in f32.
    for di in range(k):
        for dj in range(k):
            off = di * wp + dj
            x_tap = slab_ref[:, off:off + tile_m]        # (C_pad, tile_m) bf16
            w_tap = w_ref[di * k + dj]                   # (O_pad, C_pad) bf16
            acc_ref[...] += jnp.dot(w_tap, x_tap,
                                    preferred_element_type=jnp.float32)
    o_ref[0] = acc_ref[...].astype(o_ref.dtype)


def _fused_reflect_conv(x, w_oikk, *, kernel_size, padding, out_dtype=jnp.float32):
    """Fused stride-1 Conv2d (bias=False, reflect padding) for stacked weights.

    x:      (N, C, H, W) float
    w_oikk: (O, C, k, k) float  (both convs' weights stacked along O)
    returns (N, O, Hout, Wout) in out_dtype (set out_dtype=bf16 if the consumer
    tolerates it to halve output HBM traffic).
    """
    k = kernel_size
    n, c, h, w = x.shape
    o_tot = w_oikk.shape[0]
    assert w_oikk.shape[1] == c and w_oikk.shape[2] == k and w_oikk.shape[3] == k

    # bf16 BEFORE any materialization, then reflect pad (cheap, ~1x copy of x).
    if padding > 0:
        assert padding <= min(h, w) - 1, "reflect pad requires padding <= dim-1"
        xp = jnp.pad(x.astype(jnp.bfloat16),
                     ((0, 0), (0, 0), (padding, padding), (padding, padding)),
                     mode="reflect")
    else:
        xp = x.astype(jnp.bfloat16)
    hp, wp = h + 2 * padding, w + 2 * padding
    hout, wout = hp - k + 1, wp - k + 1
    assert hout > 0 and wout > 0

    c_pad = _round_up(c, 8)                       # sublane alignment of the slab
    out_bytes = jnp.dtype(out_dtype).itemsize
    o_align = 16 if out_bytes == 2 else 8         # bf16 packs 16 rows / sublane tile
    o_pad = _round_up(o_tot, o_align)

    m_img = hout * wp                             # flat output length per image
    halo = (k - 1) * wp + (k - 1)                 # largest tap offset (flat pixels)
    halo_pad = _round_up(halo, 128)
    tile_m, vmem_limit = _choose_tile_m(m_img, n, c_pad, o_pad, halo_pad, k, out_bytes)
    m_img_pad = _round_up(m_img, tile_m)
    tile_in = tile_m + halo_pad
    in_len = m_img_pad + halo_pad

    # Channel-pad + flatten pixels (the (Hp,Wp)->Hp*Wp reshape is free) + tail pad.
    xf = jnp.pad(xp, ((0, 0), (0, c_pad - c), (0, 0), (0, 0)))
    xf = xf.reshape(n, c_pad, hp * wp)
    xf = jnp.pad(xf, ((0, 0), (0, 0), (0, in_len - hp * wp)))

    # Weights packed per tap: w_taps[di*k+dj, o, c] = W[o, c, di, dj].
    w_taps = jnp.zeros((k * k, o_pad, c_pad), jnp.float32)
    w_taps = w_taps.at[:, :o_tot, :c].set(
        w_oikk.astype(jnp.float32).transpose(2, 3, 0, 1).reshape(k * k, o_tot, c))
    w_taps = w_taps.astype(jnp.bfloat16)

    grid = (n, m_img_pad // tile_m)
    flops = 2 * o_tot * c * k * k * n * hout * wout
    bytes_accessed = int(xf.size * 2 + w_taps.size * 2
                         + n * o_pad * m_img_pad * out_bytes)

    out = pl.pallas_call(
        functools.partial(_fused_conv_kernel, k=k, wp=wp,
                          tile_m=tile_m, tile_in=tile_in),
        out_shape=jax.ShapeDtypeStruct((n, o_pad, m_img_pad), out_dtype),
        grid=grid,
        in_specs=[
            # Tiny fused weight block: constant index map -> fetched once, resident.
            pl.BlockSpec((k * k, o_pad, c_pad), lambda nn, tt: (0, 0, 0)),
            # Input stays in HBM; the kernel DMAs exactly the halo'd slab it needs.
            pl.BlockSpec(memory_space=pl.ANY),
        ],
        out_specs=pl.BlockSpec((1, o_pad, tile_m), lambda nn, tt: (nn, 0, tt)),
        scratch_shapes=[
            pltpu.VMEM((c_pad, tile_in), jnp.bfloat16),      # halo'd input slab
            pltpu.VMEM((o_pad, tile_m), jnp.float32),        # f32 accumulator
            pltpu.SemaphoreType.DMA(()),
        ],
        compiler_params=pltpu.CompilerParams(
            dimension_semantics=("parallel", "parallel"),
            vmem_limit_bytes=vmem_limit),
        cost_estimate=pl.CostEstimate(flops=flops, transcendentals=0,
                                      bytes_accessed=bytes_accessed),
    )(w_taps, xf)

    # Lane-dense flat output -> NCHW via slicing only (no transpose, no extra pass
    # over a transposed copy): drop padded channels, junk rows and junk columns.
    out = out[:, :o_tot, :m_img].reshape(n, o_tot, hout, wp)[:, :, :, :wout]
    return out


# ---------------------------------------------------------------------------
# START_REST_FFC forward
# ---------------------------------------------------------------------------

def start_rest_ffc_forward(params, x_l, x_g):
    """Matches START_REST_FFC.forward: returns (convl2l(x_l), convl2g(x_l))."""
    del x_g  # unpacked but unused by the reference module's forward
    k = params["kernel_size"]
    stride = params["stride"]
    pad = params["padding"]
    w_l2l = params["w_l2l"]                      # (out_cl, in_cl, k, k)
    w_l2g = params["w_l2g"]                      # (out_cg, in_cl, k, k)
    out_cl = w_l2l.shape[0]
    assert stride in (1, 2), "Stride should be 1 or 2."

    # Fuse both convolutions: stack weights along the output-channel axis so the
    # shared input is read from HBM exactly once.
    w_cat = jnp.concatenate([w_l2l, w_l2g], axis=0)
    out = _fused_reflect_conv(x_l, w_cat, kernel_size=k, padding=pad,
                              out_dtype=jnp.float32)
    if stride == 2:
        # TODO(synk): dedicated stride-2 kernel path; subsampling the stride-1
        # result is numerically identical to Conv2d(stride=2).
        out = out[:, :, ::2, ::2]
    return out[:, :out_cl], out[:, out_cl:]


# ---------------------------------------------------------------------------
# Deterministic parameter construction (same shapes/defaults as the module)
# ---------------------------------------------------------------------------

def init_params(key, in_channels, out_channels, kernel_size,
                ratio_gin=0.75, ratio_gout=0.75, stride=1, padding=0):
    assert stride in (1, 2), "Stride should be 1 or 2."
    in_cg = int(in_channels * ratio_gin)
    in_cl = in_channels - in_cg
    out_cg = int(out_channels * ratio_gout)
    out_cl = out_channels - out_cg
    k1, k2 = jax.random.split(key)
    scale = 1.0 / float(jnp.sqrt(in_cl * kernel_size * kernel_size))
    w_l2l = scale * jax.random.normal(k1, (out_cl, in_cl, kernel_size, kernel_size),
                                      jnp.float32)
    w_l2g = scale * jax.random.normal(k2, (out_cg, in_cl, kernel_size, kernel_size),
                                      jnp.float32)
    return dict(kernel_size=kernel_size, stride=stride, padding=padding,
                w_l2l=w_l2l, w_l2g=w_l2g, dims=(in_cl, in_cg, out_cl, out_cg))


if __name__ == "__main__":
    key = jax.random.PRNGKey(0)
    kp, kl, kg = jax.random.split(key, 3)

    in_channels, out_channels, kernel_size = 8, 8, 3
    padding = (kernel_size - 1) // 2             # exercise the reflect padding
    params = init_params(kp, in_channels, out_channels, kernel_size,
                         ratio_gin=0.75, ratio_gout=0.75, stride=1, padding=padding)
    in_cl, in_cg, out_cl, out_cg = params["dims"]

    n, h, w = 2, 16, 16
    x_l = jax.random.normal(kl, (n, in_cl, h, w), jnp.float32)
    x_g = jax.random.normal(kg, (n, in_cg, h, w), jnp.float32)

    fwd = jax.jit(functools.partial(start_rest_ffc_forward, params))
    out_xl, out_xg = fwd(x_l, x_g)
    jax.block_until_ready((out_xl, out_xg))

    hout = (h + 2 * padding - kernel_size) // params["stride"] + 1
    wout = (w + 2 * padding - kernel_size) // params["stride"] + 1
    assert out_xl.shape == (n, out_cl, hout, wout), out_xl.shape
    assert out_xg.shape == (n, out_cg, hout, wout), out_xg.shape

    # Reference check against XLA's conv (f32 highest precision); tolerance
    # accounts for the bf16 MXU operands in the Pallas path.
    xp = jnp.pad(x_l, ((0, 0), (0, 0), (padding, padding), (padding, padding)),
                 mode="reflect")
    ref_l = jax.lax.conv_general_dilated(
        xp, params["w_l2l"], (1, 1), "VALID",
        dimension_numbers=("NCHW", "OIHW", "NCHW"),
        precision=jax.lax.Precision.HIGHEST)
    ref_g = jax.lax.conv_general_dilated(
        xp, params["w_l2g"], (1, 1), "VALID",
        dimension_numbers=("NCHW", "OIHW", "NCHW"),
        precision=jax.lax.Precision.HIGHEST)
    assert bool(jnp.allclose(out_xl, ref_l, atol=5e-2, rtol=5e-2))
    assert bool(jnp.allclose(out_xg, ref_g, atol=5e-2, rtol=5e-2))
    assert bool(jnp.all(jnp.isfinite(out_xl))) and bool(jnp.all(jnp.isfinite(out_xg)))
    print("KERNEL_OK")
</pallas_src>

<mosaic_0001>
module attributes {stable_mosaic.version = 11 : i64} {
  func.func @_fused_conv_kernel(%arg0: i32, %arg1: i32, %arg2: memref<9x8x8xbf16, #tpu.memory_space<vmem>>, %arg3: memref<2x8x512xbf16, #tpu.memory_space<any>>, %arg4: memref<1x8x384xf32, #tpu.memory_space<vmem>>, %arg5: memref<8x512xbf16, #tpu.memory_space<vmem>>, %arg6: memref<8x384xf32, #tpu.memory_space<vmem>>, %arg7: memref<!tpu.dma_semaphore, #tpu.memory_space<semaphore_mem>>) attributes {dimension_semantics = [#tpu.dimension_semantics<parallel>, #tpu.dimension_semantics<parallel>], iteration_bounds = array<i64: 2, 1>, scalar_prefetch = 0 : i64, scratch_operands = 3 : i64, tpu.core_type = #tpu.core_type<tc>, window_params = [{pipeline_mode = #tpu.pipeline_mode<synchronous>, transform_indices = @transform_0, window_bounds = array<i64: 9, 8, 8>}, {}, {transform_indices = @transform_2, window_bounds = array<i64: 1, 8, 384>}]} {
    %c384_i32 = arith.constant 384 : i32
    %0 = arith.muli %arg1, %c384_i32 : i32
    %1 = tpu.assume_multiple %0, 128 : i32
    %c0_i32 = arith.constant 0 : i32
    %2 = tpu.memref_slice %arg3[%arg0, %c0_i32, %1] : memref<2x8x512xbf16, #tpu.memory_space<any>> -> memref<1x8x512xbf16, #tpu.memory_space<any>>
    %3 = tpu.memref_squeeze %2 : memref<1x8x512xbf16, #tpu.memory_space<any>> -> memref<8x512xbf16, #tpu.memory_space<any>>
    tpu.enqueue_dma source(%3 : memref<8x512xbf16, #tpu.memory_space<any>>) target(%arg5 : memref<8x512xbf16, #tpu.memory_space<vmem>>) target_semaphore(%arg7 : memref<!tpu.dma_semaphore, #tpu.memory_space<semaphore_mem>>)
    %c0_i32_0 = arith.constant 0 : i32
    %4 = tpu.memref_slice %arg3[%arg0, %c0_i32_0, %1] : memref<2x8x512xbf16, #tpu.memory_space<any>> -> memref<1x8x512xbf16, #tpu.memory_space<any>>
    %5 = tpu.memref_squeeze %4 : memref<1x8x512xbf16, #tpu.memory_space<any>> -> memref<8x512xbf16, #tpu.memory_space<any>>
    tpu.wait_dma2 semaphore(%arg7 : memref<!tpu.dma_semaphore, #tpu.memory_space<semaphore_mem>>) src(%5 : memref<8x512xbf16, #tpu.memory_space<any>>) dst(%arg5 : memref<8x512xbf16, #tpu.memory_space<vmem>>)
    %cst = arith.constant 0.000000e+00 : f32
    %6 = vector.broadcast %cst : f32 to vector<8x384xf32>
    %c0 = arith.constant 0 : index
    %c0_1 = arith.constant 0 : index
    %7 = vector.load %arg6[%c0, %c0_1] : memref<8x384xf32, #tpu.memory_space<vmem>>, vector<8x384xf32>
    tpu.vector_store %arg6[%c0, %c0_1], %6 {strides = array<i32>} : memref<8x384xf32, #tpu.memory_space<vmem>>, vector<8x384xf32>,
    %c0_2 = arith.constant 0 : index
    %c0_3 = arith.constant 0 : index
    %8 = vector.load %arg5[%c0_2, %c0_3] : memref<8x512xbf16, #tpu.memory_space<vmem>>, vector<8x384xbf16>
    %c0_4 = arith.constant 0 : index
    %c0_5 = arith.constant 0 : index
    %c0_6 = arith.constant 0 : index
    %9 = vector.load %arg2[%c0_4, %c0_5, %c0_6] : memref<9x8x8xbf16, #tpu.memory_space<vmem>>, vector<1x8x8xbf16>
    %10 = vector.shape_cast %9 : vector<1x8x8xbf16> to vector<8x8xbf16>
    %c0_7 = arith.constant 0 : index
    %c0_8 = arith.constant 0 : index
    %11 = vector.load %arg6[%c0_7, %c0_8] : memref<8x384xf32, #tpu.memory_space<vmem>>, vector<8x384xf32>
    %cst_9 = arith.constant dense<0.000000e+00> : vector<8x384xf32>
    %12 = tpu.matmul %10, %8, %cst_9 {dimension_numbers = #tpu.dot_dimension_numbers<[1], [0], [0], [1], [0, 0, 1, 1], [], []>} : vector<8x8xbf16>, vector<8x384xbf16>, vector<8x384xf32> -> vector<8x384xf32>
    %13 = arith.addf %11, %12 : vector<8x384xf32>
    %c0_10 = arith.constant 0 : index
    %c0_11 = arith.constant 0 : index
    %14 = vector.load %arg6[%c0_10, %c0_11] : memref<8x384xf32, #tpu.memory_space<vmem>>, vector<8x384xf32>
    tpu.vector_store %arg6[%c0_10, %c0_11], %13 {strides = array<i32>} : memref<8x384xf32, #tpu.memory_space<vmem>>, vector<8x384xf32>,
    %c0_12 = arith.constant 0 : index
    %c1 = arith.constant 1 : index
    %15 = vector.load %arg5[%c0_12, %c1] : memref<8x512xbf16, #tpu.memory_space<vmem>>, vector<8x384xbf16>
    %c1_13 = arith.constant 1 : index
    %c0_14 = arith.constant 0 : index
    %c0_15 = arith.constant 0 : index
    %16 = vector.load %arg2[%c1_13, %c0_14, %c0_15] : memref<9x8x8xbf16, #tpu.memory_space<vmem>>, vector<1x8x8xbf16>
    %17 = vector.shape_cast %16 : vector<1x8x8xbf16> to vector<8x8xbf16>
    %c0_16 = arith.constant 0 : index
    %c0_17 = arith.constant 0 : index
    %18 = vector.load %arg6[%c0_16, %c0_17] : memref<8x384xf32, #tpu.memory_space<vmem>>, vector<8x384xf32>
    %cst_18 = arith.constant dense<0.000000e+00> : vector<8x384xf32>
    %19 = tpu.matmul %17, %15, %cst_18 {dimension_numbers = #tpu.dot_dimension_numbers<[1], [0], [0], [1], [0, 0, 1, 1], [], []>} : vector<8x8xbf16>, vector<8x384xbf16>, vector<8x384xf32> -> vector<8x384xf32>
    %20 = arith.addf %18, %19 : vector<8x384xf32>
    %c0_19 = arith.constant 0 : index
    %c0_20 = arith.constant 0 : index
    %21 = vector.load %arg6[%c0_19, %c0_20] : memref<8x384xf32, #tpu.memory_space<vmem>>, vector<8x384xf32>
    tpu.vector_store %arg6[%c0_19, %c0_20], %20 {strides = array<i32>} : memref<8x384xf32, #tpu.memory_space<vmem>>, vector<8x384xf32>,
    %c0_21 = arith.constant 0 : index
    %c2 = arith.constant 2 : index
    %22 = vector.load %arg5[%c0_21, %c2] : memref<8x512xbf16, #tpu.memory_space<vmem>>, vector<8x384xbf16>
    %c2_22 = arith.constant 2 : index
    %c0_23 = arith.constant 0 : index
    %c0_24 = arith.constant 0 : index
    %23 = vector.load %arg2[%c2_22, %c0_23, %c0_24] : memref<9x8x8xbf16, #tpu.memory_space<vmem>>, vector<1x8x8xbf16>
    %24 = vector.shape_cast %23 : vector<1x8x8xbf16> to vector<8x8xbf16>
    %c0_25 = arith.constant 0 : index
    %c0_26 = arith.constant 0 : index
    %25 = vector.load %arg6[%c0_25, %c0_26] : memref<8x384xf32, #tpu.memory_space<vmem>>, vector<8x384xf32>
    %cst_27 = arith.constant dense<0.000000e+00> : vector<8x384xf32>
    %26 = tpu.matmul %24, %22, %cst_27 {dimension_numbers = #tpu.dot_dimension_numbers<[1], [0], [0], [1], [0, 0, 1, 1], [], []>} : vector<8x8xbf16>, vector<8x384xbf16>, vector<8x384xf32> -> vector<8x384xf32>
    %27 = arith.addf %25, %26 : vector<8x384xf32>
    %c0_28 = arith.constant 0 : index
    %c0_29 = arith.constant 0 : index
    %28 = vector.load %arg6[%c0_28, %c0_29] : memref<8x384xf32, #tpu.memory_space<vmem>>, vector<8x384xf32>
    tpu.vector_store %arg6[%c0_28, %c0_29], %27 {strides = array<i32>} : memref<8x384xf32, #tpu.memory_space<vmem>>, vector<8x384xf32>,
    %c0_30 = arith.constant 0 : index
    %c18 = arith.constant 18 : index
    %29 = vector.load %arg5[%c0_30, %c18] : memref<8x512xbf16, #tpu.memory_space<vmem>>, vector<8x384xbf16>
    %c3 = arith.constant 3 : index
    %c0_31 = arith.constant 0 : index
    %c0_32 = arith.constant 0 : index
    %30 = vector.load %arg2[%c3, %c0_31, %c0_32] : memref<9x8x8xbf16, #tpu.memory_space<vmem>>, vector<1x8x8xbf16>
    %31 = vector.shape_cast %30 : vector<1x8x8xbf16> to vector<8x8xbf16>
    %c0_33 = arith.constant 0 : index
    %c0_34 = arith.constant 0 : index
    %32 = vector.load %arg6[%c0_33, %c0_34] : memref<8x384xf32, #tpu.memory_space<vmem>>, vector<8x384xf32>
    %cst_35 = arith.constant dense<0.000000e+00> : vector<8x384xf32>
    %33 = tpu.matmul %31, %29, %cst_35 {dimension_numbers = #tpu.dot_dimension_numbers<[1], [0], [0], [1], [0, 0, 1, 1], [], []>} : vector<8x8xbf16>, vector<8x384xbf16>, vector<8x384xf32> -> vector<8x384xf32>
    %34 = arith.addf %32, %33 : vector<8x384xf32>
    %c0_36 = arith.constant 0 : index
    %c0_37 = arith.constant 0 : index
    %35 = vector.load %arg6[%c0_36, %c0_37] : memref<8x384xf32, #tpu.memory_space<vmem>>, vector<8x384xf32>
    tpu.vector_store %arg6[%c0_36, %c0_37], %34 {strides = array<i32>} : memref<8x384xf32, #tpu.memory_space<vmem>>, vector<8x384xf32>,
    %c0_38 = arith.constant 0 : index
    %c19 = arith.constant 19 : index
    %36 = vector.load %arg5[%c0_38, %c19] : memref<8x512xbf16, #tpu.memory_space<vmem>>, vector<8x384xbf16>
    %c4 = arith.constant 4 : index
    %c0_39 = arith.constant 0 : index
    %c0_40 = arith.constant 0 : index
    %37 = vector.load %arg2[%c4, %c0_39, %c0_40] : memref<9x8x8xbf16, #tpu.memory_space<vmem>>, vector<1x8x8xbf16>
    %38 = vector.shape_cast %37 : vector<1x8x8xbf16> to vector<8x8xbf16>
    %c0_41 = arith.constant 0 : index
    %c0_42 = arith.constant 0 : index
    %39 = vector.load %arg6[%c0_41, %c0_42] : memref<8x384xf32, #tpu.memory_space<vmem>>, vector<8x384xf32>
    %cst_43 = arith.constant dense<0.000000e+00> : vector<8x384xf32>
    %40 = tpu.matmul %38, %36, %cst_43 {dimension_numbers = #tpu.dot_dimension_numbers<[1], [0], [0], [1], [0, 0, 1, 1], [], []>} : vector<8x8xbf16>, vector<8x384xbf16>, vector<8x384xf32> -> vector<8x384xf32>
    %41 = arith.addf %39, %40 : vector<8x384xf32>
    %c0_44 = arith.constant 0 : index
    %c0_45 = arith.constant 0 : index
    %42 = vector.load %arg6[%c0_44, %c0_45] : memref<8x384xf32, #tpu.memory_space<vmem>>, vector<8x384xf32>
    tpu.vector_store %arg6[%c0_44, %c0_45], %41 {strides = array<i32>} : memref<8x384xf32, #tpu.memory_space<vmem>>, vector<8x384xf32>,
    %c0_46 = arith.constant 0 : index
    %c20 = arith.constant 20 : index
    %43 = vector.load %arg5[%c0_46, %c20] : memref<8x512xbf16, #tpu.memory_space<vmem>>, vector<8x384xbf16>
    %c5 = arith.constant 5 : index
    %c0_47 = arith.constant 0 : index
    %c0_48 = arith.constant 0 : index
    %44 = vector.load %arg2[%c5, %c0_47, %c0_48] : memref<9x8x8xbf16, #tpu.memory_space<vmem>>, vector<1x8x8xbf16>
    %45 = vector.shape_cast %44 : vector<1x8x8xbf16> to vector<8x8xbf16>
    %c0_49 = arith.constant 0 : index
    %c0_50 = arith.constant 0 : index
    %46 = vector.load %arg6[%c0_49, %c0_50] : memref<8x384xf32, #tpu.memory_space<vmem>>, vector<8x384xf32>
    %cst_51 = arith.constant dense<0.000000e+00> : vector<8x384xf32>
    %47 = tpu.matmul %45, %43, %cst_51 {dimension_numbers = #tpu.dot_dimension_numbers<[1], [0], [0], [1], [0, 0, 1, 1], [], []>} : vector<8x8xbf16>, vector<8x384xbf16>, vector<8x384xf32> -> vector<8x384xf32>
    %48 = arith.addf %46, %47 : vector<8x384xf32>
    %c0_52 = arith.constant 0 : index
    %c0_53 = arith.constant 0 : index
    %49 = vector.load %arg6[%c0_52, %c0_53] : memref<8x384xf32, #tpu.memory_space<vmem>>, vector<8x384xf32>
    tpu.vector_store %arg6[%c0_52, %c0_53], %48 {strides = array<i32>} : memref<8x384xf32, #tpu.memory_space<vmem>>, vector<8x384xf32>,
    %c0_54 = arith.constant 0 : index
    %c36 = arith.constant 36 : index
    %50 = vector.load %arg5[%c0_54, %c36] : memref<8x512xbf16, #tpu.memory_space<vmem>>, vector<8x384xbf16>
    %c6 = arith.constant 6 : index
    %c0_55 = arith.constant 0 : index
    %c0_56 = arith.constant 0 : index
    %51 = vector.load %arg2[%c6, %c0_55, %c0_56] : memref<9x8x8xbf16, #tpu.memory_space<vmem>>, vector<1x8x8xbf16>
    %52 = vector.shape_cast %51 : vector<1x8x8xbf16> to vector<8x8xbf16>
    %c0_57 = arith.constant 0 : index
    %c0_58 = arith.constant 0 : index
    %53 = vector.load %arg6[%c0_57, %c0_58] : memref<8x384xf32, #tpu.memory_space<vmem>>, vector<8x384xf32>
    %cst_59 = arith.constant dense<0.000000e+00> : vector<8x384xf32>
    %54 = tpu.matmul %52, %50, %cst_59 {dimension_numbers = #tpu.dot_dimension_numbers<[1], [0], [0], [1], [0, 0, 1, 1], [], []>} : vector<8x8xbf16>, vector<8x384xbf16>, vector<8x384xf32> -> vector<8x384xf32>
    %55 = arith.addf %53, %54 : vector<8x384xf32>
    %c0_60 = arith.constant 0 : index
    %c0_61 = arith.constant 0 : index
    %56 = vector.load %arg6[%c0_60, %c0_61] : memref<8x384xf32, #tpu.memory_space<vmem>>, vector<8x384xf32>
    tpu.vector_store %arg6[%c0_60, %c0_61], %55 {strides = array<i32>} : memref<8x384xf32, #tpu.memory_space<vmem>>, vector<8x384xf32>,
    %c0_62 = arith.constant 0 : index
    %c37 = arith.constant 37 : index
    %57 = vector.load %arg5[%c0_62, %c37] : memref<8x512xbf16, #tpu.memory_space<vmem>>, vector<8x384xbf16>
    %c7 = arith.constant 7 : index
    %c0_63 = arith.constant 0 : index
    %c0_64 = arith.constant 0 : index
    %58 = vector.load %arg2[%c7, %c0_63, %c0_64] : memref<9x8x8xbf16, #tpu.memory_space<vmem>>, vector<1x8x8xbf16>
    %59 = vector.shape_cast %58 : vector<1x8x8xbf16> to vector<8x8xbf16>
    %c0_65 = arith.constant 0 : index
    %c0_66 = arith.constant 0 : index
    %60 = vector.load %arg6[%c0_65, %c0_66] : memref<8x384xf32, #tpu.memory_space<vmem>>, vector<8x384xf32>
    %cst_67 = arith.constant dense<0.000000e+00> : vector<8x384xf32>
    %61 = tpu.matmul %59, %57, %cst_67 {dimension_numbers = #tpu.dot_dimension_numbers<[1], [0], [0], [1], [0, 0, 1, 1], [], []>} : vector<8x8xbf16>, vector<8x384xbf16>, vector<8x384xf32> -> vector<8x384xf32>
    %62 = arith.addf %60, %61 : vector<8x384xf32>
    %c0_68 = arith.constant 0 : index
    %c0_69 = arith.constant 0 : index
    %63 = vector.load %arg6[%c0_68, %c0_69] : memref<8x384xf32, #tpu.memory_space<vmem>>, vector<8x384xf32>
    tpu.vector_store %arg6[%c0_68, %c0_69], %62 {strides = array<i32>} : memref<8x384xf32, #tpu.memory_space<vmem>>, vector<8x384xf32>,
    %c0_70 = arith.constant 0 : index
    %c38 = arith.constant 38 : index
    %64 = vector.load %arg5[%c0_70, %c38] : memref<8x512xbf16, #tpu.memory_space<vmem>>, vector<8x384xbf16>
    %c8 = arith.constant 8 : index
    %c0_71 = arith.constant 0 : index
    %c0_72 = arith.constant 0 : index
    %65 = vector.load %arg2[%c8, %c0_71, %c0_72] : memref<9x8x8xbf16, #tpu.memory_space<vmem>>, vector<1x8x8xbf16>
    %66 = vector.shape_cast %65 : vector<1x8x8xbf16> to vector<8x8xbf16>
    %c0_73 = arith.constant 0 : index
    %c0_74 = arith.constant 0 : index
    %67 = vector.load %arg6[%c0_73, %c0_74] : memref<8x384xf32, #tpu.memory_space<vmem>>, vector<8x384xf32>
    %cst_75 = arith.constant dense<0.000000e+00> : vector<8x384xf32>
    %68 = tpu.matmul %66, %64, %cst_75 {dimension_numbers = #tpu.dot_dimension_numbers<[1], [0], [0], [1], [0, 0, 1, 1], [], []>} : vector<8x8xbf16>, vector<8x384xbf16>, vector<8x384xf32> -> vector<8x384xf32>
    %69 = arith.addf %67, %68 : vector<8x384xf32>
    %c0_76 = arith.constant 0 : index
    %c0_77 = arith.constant 0 : index
    %70 = vector.load %arg6[%c0_76, %c0_77] : memref<8x384xf32, #tpu.memory_space<vmem>>, vector<8x384xf32>
    tpu.vector_store %arg6[%c0_76, %c0_77], %69 {strides = array<i32>} : memref<8x384xf32, #tpu.memory_space<vmem>>, vector<8x384xf32>,
    %c0_78 = arith.constant 0 : index
    %c0_79 = arith.constant 0 : index
    %71 = vector.load %arg6[%c0_78, %c0_79] : memref<8x384xf32, #tpu.memory_space<vmem>>, vector<8x384xf32>
    %c0_80 = arith.constant 0 : index
    %c0_81 = arith.constant 0 : index
    %c0_82 = arith.constant 0 : index
    %72 = vector.load %arg4[%c0_80, %c0_81, %c0_82] : memref<1x8x384xf32, #tpu.memory_space<vmem>>, vector<1x8x384xf32>
    %73 = vector.shape_cast %72 : vector<1x8x384xf32> to vector<8x384xf32>
    %74 = vector.shape_cast %71 : vector<8x384xf32> to vector<1x8x384xf32>
    tpu.vector_store %arg4[%c0_80, %c0_81, %c0_82], %74 {strides = array<i32>} : memref<1x8x384xf32, #tpu.memory_space<vmem>>, vector<1x8x384xf32>,
    return
  }
  func.func @transform_0(%arg0: i32, %arg1: i32) -> (i32, i32, i32) {
    %c0_i32 = arith.constant 0 : i32
    %c0_i32_0 = arith.constant 0 : i32
    %c0_i32_1 = arith.constant 0 : i32
    %c0_i32_2 = arith.constant 0 : i32
    return %c0_i32, %c0_i32_0, %c0_i32_1 : i32, i32, i32
  }
  func.func @transform_2(%arg0: i32, %arg1: i32) -> (i32, i32, i32) {
    %c0_i32 = arith.constant 0 : i32
    %c0_i32_0 = arith.constant 0 : i32
    return %arg0, %c0_i32, %arg1 : i32, i32, i32
  }
}

</mosaic_0001>

<bundles_post_ra>
// kernel: start_rest_ffc_forward.1
= control target key start
LH: loop header
LB: loop body
LE: loop exit
PB: predicated region body
PF: predicated region fallthrough
CT: control target
= control target key end

     0   :  { %s1722_s9 = smov 0   ;;  %s1724_s10 = smov 0   ;;  %s1880_s0 = inlined_call_operand.vmem [shape: bf16[9,8,8], index: 0, kind: input, shape index: {}]   ;;  %s1881_s1 = inlined_call_operand.vmem [shape: bf16[2,8,512], index: 1, kind: input, shape index: {}]   ;;  %s1882_s2 = inlined_call_operand.vmem [shape: f32[2,8,384], index: 2, kind: output, shape index: {}]  }
   0x1   :  { %s1726_s11 = smov 0  }
   0x2 LB: > { %s24_s12 = sadd.s32 1, %s1690_s10  ;;  %p1415_p0 = scmp.ge.s32.totalorder %s1694_s11, 1  ;;  %s1694_s11 = sphi %s1726_s11, %s12_s11   ;;  %s1690_s10 = sphi %s1724_s10, %s1884_s10   ;;  %s1686_s9 = sphi %s1722_s9, %s1883_s9  }
   0x3   : > { %p26_p1 = scmp.ge.s32.totalorder %s24_s12, 2  ;;  %p92_p2 = scmp.lt.s32.totalorder %s1694_s11, 3 }
   0x5   : > { %s1886_s12 = smov (%p26_p1, %s24_s12), 0  ;;  %p93_p3 = pnand %p1415_p0, %p92_p2 }
   0x6   : > { %p112_p4 = scmp.lt.s32.totalorder (!%p93_p3), %s1686_s9, 1  ;;  %s1492_s13 = sshll.u32 (!%p93_p3), %s1686_s9, 4 }
   0x7   : > { %96 = sbr.rel (%p93_p3) target bundleno = 447 (0x1bf), region = 24  ;;  %s128_s16 = scalar_lea.vmem (!%p93_p3), %s1881_s1, %s1492_s13 }
   0x8   : > { %v161_v0 = vld [vmem:[%s128_s16] sm:$0xff] (!%p93_p3)  ;;  %v163_v1 = vld [vmem:[%s128_s16 + $0x8] sm:$0xff] (!%p93_p3) }
   0x9   : > { %162 = vst [vmem:[#allocation2] sm:$0xff] (!%p93_p3), %v161_v0  ;;  %164 = vst [vmem:[#allocation2 + $0x8] sm:$0xff] (!%p93_p3), %v163_v1 }
   0xe   : > { %s1888_s9 = smov (!%p112_p4, %s1686_s9), 1 }
   0xf   : > { %s1629_s17 = smul.u32 24, %s1888_s9 }
  0x11   : > { %s1746_s20 = scalar_lea.vmem %s1882_s2, %s1629_s17 }
  0x12   : > { %172 = vsyncadd [#allocation4], 256 }
  0x13   : > { %1682 = dma.done.wait [#allocation4], 256 }
  0x14   : > { %1683 = vsyncadd [#allocation4], 4294967040  ;;  %v1696_v2 = vmov 0.0   ;;  %v1697_v3 = vmov 0   ;;  %vm1698_vm0 = vmmov 0   ;;  %v296_v4 = vld [vmem:[#allocation2 + $0x8] sm:$0xff] }
  0x15   : > { %1511 = vmatprep.subr.bf16.mxu1 %v1696_v2  ;;  %240 = vmatprep.mubr.bf16.mxu0 %v1697_v3  ;;  %v295_v5 = vld [vmem:[#allocation2] sm:$0xff]  ;;  %vm198_vm1 = vcmask 1043456   ;;  %v1428_v6 = vcombine.low %v296_v4, %v296_v4  ;;  %v1669_v8 = vld [vmem:[#allocation2 + $0x8] ss:$0 sps:$4 sm:$0xff]   ;;  %v1429_v10 = vcombine.high %v296_v4, %v296_v4  ;;  %s1699_s21 = smov 127   ;;  %vm194_vm2 = vcmask 64512  }
  0x16   : > { %1513 = vmatprep.mubr.msk.bf16.mxu1 %vm1698_vm0, %v1696_v2  ;;  %v1426_v7 = vcombine.low %v295_v5, %v295_v5  ;;  %v1427_v9 = vcombine.high %v295_v5, %v295_v5  ;;  %v206_v12 = vsel %vm198_vm1, %v1669_v8, 0  ;;  %v182_v13 = vld [vmem:[%s1880_s0] sm:$0xf]  ;;  %s1700_s24 = smov 126   ;;  %s1701_s25 = smov 110   ;;  %vm320_vm3 = vcmask 1039360  }
  0x17   : > { %316 = vrot.lane.b32.xlu1 %v1428_v6, %s1699_s21  ;;  %1512 = vmatpush3.bf16.msra.mxu1 %v206_v12  ;;  %s1702_s26 = smov 109   ;;  %s1703_s27 = smov 108   ;;  %vm448_vm4 = vcmask 1031168   ;;  %v1425_v23 = vld [vmem:[%s1880_s0 + $0x4] sm:$0xf]  ;;  %vm576_vm5 = vcmask 900096  }
  0x18   : > { %312 = vrot.lane.b32.xlu0 %v1426_v7, %s1699_s21  ;;  %v200_v11 = vsel %vm198_vm1, %v1426_v7, 0  ;;  %1422 = vmatprep.subr.msk.bf16.mxu0 %vm198_vm1, %v1427_v9  ;;  %s1704_s28 = smov 92   ;;  %s1705_s29 = smov 91   ;;  %v1433_v36 = vld [vmem:[%s1880_s0 + $0x8] sm:$0xf]  ;;  %vm704_vm6 = vcmask 891904  }
  0x19   : > { %209 = vmatpush1.bf16.msra.mxu0 %v200_v11  ;;  %1517 = vmatprep.subr.bf16.mxu1 %v1696_v2  ;;  %s1706_s30 = smov 90   ;;  %v1441_v50 = vld [vmem:[%s1880_s0 + $0xc] sm:$0xf]  ;;  %vm832_vm7 = vcmask 883712   ;;  %v1449_v61 = vld [vmem:[%s1880_s0 + $0x10] sm:$0xf] }
  0x1a   : > { %1514 = vmatmul.mubr.msk.bf16.vlgmr.msra.gmra.mrb[0].mxu1 %vm194_vm2, %v182_v13  ;;  %vm960_vm8 = vcmask 752640   ;;  %vm1088_vm9 = vcmask 744448   ;;  %vm1216_vm10 = vcmask 736256  }
  0x1b   : > { %318 = vrot.lane.b32.xlu1 %v1429_v10, %s1699_s21  ;;  %1519 = vmatprep.mubr.msk.bf16.mxu1 %vm1698_vm0, %v1696_v2 }
  0x1c   : > { %314 = vrot.lane.b32.xlu0 %v1427_v9, %s1699_s21  ;;  %1423 = vmatmul.mubr.msk.bf16.vlgmr.msra.gmra.mrb[0].mxu0 %vm194_vm2, %v182_v13 }
  0x1d   : > { %368 = vmatprep.mubr.bf16.mxu0 %v1697_v3 }
  0x1f   : > { %442 = vrot.lane.b32.xlu1 %v1427_v9, %s1700_s24 }
  0x20   : > { %440 = vrot.lane.b32.xlu0 %v1426_v7, %s1700_s24 }
  0x23   : > { %446 = vrot.lane.b32.xlu1 %v1429_v10, %s1700_s24 }
  0x24   : > { %444 = vrot.lane.b32.xlu0 %v1428_v6, %s1700_s24 }
  0x27   : > { %570 = vrot.lane.b32.xlu1 %v1427_v9, %s1701_s25 }
  0x28   : > { %568 = vrot.lane.b32.xlu0 %v1426_v7, %s1701_s25 }
  0x2b   : > { %574 = vrot.lane.b32.xlu1 %v1429_v10, %s1701_s25 }
  0x2c   : > { %572 = vrot.lane.b32.xlu0 %v1428_v6, %s1701_s25 }
  0x2f   : > { %698 = vrot.lane.b32.xlu1 %v1427_v9, %s1702_s26 }
  0x30   : > { %696 = vrot.lane.b32.xlu0 %v1426_v7, %s1702_s26 }
  0x33   : > { %702 = vrot.lane.b32.xlu1 %v1429_v10, %s1702_s26 }
  0x34   : > { %700 = vrot.lane.b32.xlu0 %v1428_v6, %s1702_s26 }
  0x37   : > { %826 = vrot.lane.b32.xlu1 %v1427_v9, %s1703_s27 }
  0x38   : > { %824 = vrot.lane.b32.xlu0 %v1426_v7, %s1703_s27 }
  0x3b   : > { %830 = vrot.lane.b32.xlu1 %v1429_v10, %s1703_s27 }
  0x3c   : > { %828 = vrot.lane.b32.xlu0 %v1428_v6, %s1703_s27 }
  0x3f   : > { %954 = vrot.lane.b32.xlu1 %v1427_v9, %s1704_s28 }
  0x40   : > { %952 = vrot.lane.b32.xlu0 %v1426_v7, %s1704_s28 }
  0x43   : > { %958 = vrot.lane.b32.xlu1 %v1429_v10, %s1704_s28 }
  0x44   : > { %956 = vrot.lane.b32.xlu0 %v1428_v6, %s1704_s28 }
  0x47   : > { %1082 = vrot.lane.b32.xlu1 %v1427_v9, %s1705_s29 }
  0x48   : > { %1080 = vrot.lane.b32.xlu0 %v1426_v7, %s1705_s29 }
  0x4b   : > { %1086 = vrot.lane.b32.xlu1 %v1429_v10, %s1705_s29 }
  0x4c   : > { %1084 = vrot.lane.b32.xlu0 %v1428_v6, %s1705_s29 }
  0x4f   : > { %1210 = vrot.lane.b32.xlu1 %v1427_v9, %s1706_s30  ;;  %v1457_v9 = vld [vmem:[%s1880_s0 + $0x14] sm:$0xf] }
  0x50   : > { %1208 = vrot.lane.b32.xlu0 %v1426_v7, %s1706_s30 }
  0x53   : > { %1214 = vrot.lane.b32.xlu1 %v1429_v10, %s1706_s30 }
  0x54   : > { %1212 = vrot.lane.b32.xlu0 %v1428_v6, %s1706_s30 }
  0x89   : > { %v317_v14 = vpop.permute.xlu1 %316 }
  0x8a   : > { %v313_v15 = vpop.permute.xlu0 %312 }
  0x8d   : > { %v319_v16 = vpop.permute.xlu1 %318 }
  0x8e   : > { %v315_v17 = vpop.permute.xlu0 %314  ;;  %v323_v18 = vsel %vm320_vm3, %v317_v14, %v319_v16 }
  0x8f   : > { %v321_v19 = vsel %vm320_vm3, %v313_v15, %v315_v17  ;;  %v322_v20 = vsel %vm320_vm3, %v315_v17, %v317_v14  ;;  %v334_v21 = vsel %vm198_vm1, %v323_v18, 0 }
  0x90   : > { %v328_v22 = vsel %vm198_vm1, %v321_v19, 0  ;;  %1430 = vmatprep.subr.msk.bf16.mxu0 %vm198_vm1, %v322_v20  ;;  %1518 = vmatpush3.bf16.msra.mxu1 %v334_v21  ;;  %v1465_v19 = vld [vmem:[%s1880_s0 + $0x18] sm:$0xf] }
  0x91   : > { %337 = vmatpush1.bf16.msra.mxu0 %v328_v22  ;;  %v443_v25 = vpop.permute.xlu1 %442  ;;  %1523 = vmatprep.subr.bf16.mxu1 %v1696_v2 }
  0x92   : > { %v441_v24 = vpop.permute.xlu0 %440 }
  0x93   : > { %v449_v26 = vsel %vm448_vm4, %v441_v24, %v443_v25  ;;  %1520 = vmatmul.mubr.msk.bf16.vlgmr.msra.gmra.mrb[0].mxu1 %vm194_vm2, %v1425_v23 }
  0x94   : > { %1431 = vmatmul.mubr.msk.bf16.vlgmr.msra.gmra.mrb[0].mxu0 %vm194_vm2, %v1425_v23  ;;  %1525 = vmatprep.mubr.msk.bf16.mxu1 %vm1698_vm0, %v1696_v2  ;;  %v456_v27 = vsel %vm198_vm1, %v449_v26, 0 }
  0x95   : > { %496 = vmatprep.mubr.bf16.mxu0 %v1697_v3  ;;  %v447_v29 = vpop.permute.xlu1 %446 }
  0x96   : > { %v445_v28 = vpop.permute.xlu0 %444 }
  0x97   : > { %v450_v30 = vsel %vm448_vm4, %v443_v25, %v445_v28  ;;  %v451_v31 = vsel %vm448_vm4, %v445_v28, %v447_v29  ;;  %v1473_v28 = vld [vmem:[%s1880_s0 + $0x1c] sm:$0xf] }
  0x98   : > { %1438 = vmatprep.subr.msk.bf16.mxu0 %vm198_vm1, %v450_v30  ;;  %v462_v32 = vsel %vm198_vm1, %v451_v31, 0  ;;  %v1481_v31 = vld [vmem:[%s1880_s0 + $0x20] sm:$0xf] }
  0x99   : > { %465 = vmatpush1.bf16.msra.mxu0 %v456_v27  ;;  %1524 = vmatpush3.bf16.msra.mxu1 %v462_v32  ;;  %v571_v34 = vpop.permute.xlu1 %570 }
  0x9a   : > { %v569_v33 = vpop.permute.xlu0 %568  ;;  %1529 = vmatprep.subr.bf16.mxu1 %v1696_v2 }
  0x9b   : > { %v577_v35 = vsel %vm576_vm5, %v569_v33, %v571_v34 }
  0x9c   : > { %v584_v39 = vsel %vm198_vm1, %v577_v35, 0 }
  0x9d   : > { %v575_v38 = vpop.permute.xlu1 %574 }
  0x9e   : > { %v573_v37 = vpop.permute.xlu0 %572 }
  0x9f   : > { %v578_v40 = vsel %vm576_vm5, %v571_v34, %v573_v37  ;;  %v579_v41 = vsel %vm576_vm5, %v573_v37, %v575_v38  ;;  %1526 = vmatmul.mubr.msk.bf16.vlgmr.msra.gmra.mrb[0].mxu1 %vm194_vm2, %v1433_v36 }
  0xa0   : > { %1439 = vmatmul.mubr.msk.bf16.vlgmr.msra.gmra.mrb[0].mxu0 %vm194_vm2, %v1433_v36  ;;  %v590_v42 = vsel %vm198_vm1, %v579_v41, 0  ;;  %1446 = vmatprep.subr.msk.bf16.mxu0 %vm198_vm1, %v578_v40 }
  0xa1   : > { %1530 = vmatpush3.bf16.msra.mxu1 %v590_v42  ;;  %593 = vmatpush1.bf16.msra.mxu0 %v584_v39  ;;  %v699_v44 = vpop.permute.xlu1 %698 }
  0xa2   : > { %v697_v43 = vpop.permute.xlu0 %696  ;;  %624 = vmatprep.mubr.bf16.mxu0 %v1697_v3  ;;  %1531 = vmatprep.mubr.msk.bf16.mxu1 %vm1698_vm0, %v1696_v2 }
  0xa3   : > { %1535 = vmatprep.subr.bf16.mxu1 %v1696_v2  ;;  %v705_v47 = vsel %vm704_vm6, %v697_v43, %v699_v44 }
  0xa4   : > { %v712_v51 = vsel %vm198_vm1, %v705_v47, 0 }
  0xa5   : > { %v703_v46 = vpop.permute.xlu1 %702 }
  0xa6   : > { %v701_v45 = vpop.permute.xlu0 %700 }
  0xa7   : > { %v706_v48 = vsel %vm704_vm6, %v699_v44, %v701_v45  ;;  %v707_v49 = vsel %vm704_vm6, %v701_v45, %v703_v46 }
  0xa8   : > { %1454 = vmatprep.subr.msk.bf16.mxu0 %vm198_vm1, %v706_v48  ;;  %v718_v52 = vsel %vm198_vm1, %v707_v49, 0 }
  0xa9   : > { %v827_v54 = vpop.permute.xlu1 %826 }
  0xaa   : > { %v825_v53 = vpop.permute.xlu0 %824 }
  0xab   : > { %1532 = vmatmul.mubr.msk.bf16.vlgmr.msra.gmra.mrb[0].mxu1 %vm194_vm2, %v1441_v50  ;;  %v833_v59 = vsel %vm832_vm7, %v825_v53, %v827_v54 }
  0xac   : > { %1447 = vmatmul.mubr.msk.bf16.vlgmr.msra.gmra.mrb[0].mxu0 %vm194_vm2, %v1441_v50  ;;  %1536 = vmatpush3.bf16.msra.mxu1 %v718_v52  ;;  %v840_v63 = vsel %vm198_vm1, %v833_v59, 0 }
  0xad   : > { %721 = vmatpush1.bf16.msra.mxu0 %v712_v51  ;;  %752 = vmatprep.mubr.bf16.mxu0 %v1697_v3  ;;  %v831_v57 = vpop.permute.xlu1 %830 }
  0xae   : > { %1537 = vmatprep.mubr.msk.bf16.mxu1 %vm1698_vm0, %v1696_v2  ;;  %v829_v55 = vpop.permute.xlu0 %828  ;;  %1541 = vmatprep.subr.bf16.mxu1 %v1696_v2 }
  0xaf   : > { %v834_v56 = vsel %vm832_vm7, %v827_v54, %v829_v55  ;;  %v835_v60 = vsel %vm832_vm7, %v829_v55, %v831_v57 }
  0xb0   : > { %1462 = vmatprep.subr.msk.bf16.mxu0 %vm198_vm1, %v834_v56  ;;  %v846_v0 = vsel %vm198_vm1, %v835_v60, 0 }
  0xb1   : > { %v955_v62 = vpop.permute.xlu1 %954 }
  0xb2   : > { %v953_v58 = vpop.permute.xlu0 %952 }
  0xb3   : > { %v961_v7 = vsel %vm960_vm8, %v953_v58, %v955_v62 }
  0xb4   : > { %v968_v12 = vsel %vm198_vm1, %v961_v7, 0 }
  0xb5   : > { %v959_v6 = vpop.permute.xlu1 %958 }
  0xb6   : > { %v957_v1 = vpop.permute.xlu0 %956 }
  0xb7   : > { %1538 = vmatmul.mubr.msk.bf16.vlgmr.msra.gmra.mrb[0].mxu1 %vm194_vm2, %v1449_v61  ;;  %v962_v4 = vsel %vm960_vm8, %v955_v62, %v957_v1  ;;  %v963_v8 = vsel %vm960_vm8, %v957_v1, %v959_v6 }
  0xb8   : > { %1455 = vmatmul.mubr.msk.bf16.vlgmr.msra.gmra.mrb[0].mxu0 %vm194_vm2, %v1449_v61  ;;  %1542 = vmatpush3.bf16.msra.mxu1 %v846_v0  ;;  %v974_v13 = vsel %vm198_vm1, %v963_v8, 0 }
  0xb9   : > { %849 = vmatpush1.bf16.msra.mxu0 %v840_v63  ;;  %880 = vmatprep.mubr.bf16.mxu0 %v1697_v3  ;;  %v1083_v10 = vpop.permute.xlu1 %1082 }
  0xba   : > { %1543 = vmatprep.mubr.msk.bf16.mxu1 %vm1698_vm0, %v1696_v2  ;;  %1470 = vmatprep.subr.msk.bf16.mxu0 %vm198_vm1, %v962_v4  ;;  %v1081_v5 = vpop.permute.xlu0 %1080 }
  0xbb   : > { %1547 = vmatprep.subr.bf16.mxu1 %v1696_v2  ;;  %v1089_v17 = vsel %vm1088_vm9, %v1081_v5, %v1083_v10 }
  0xbc   : > { %v1096_v22 = vsel %vm198_vm1, %v1089_v17, 0 }
  0xbd   : > { %v1087_v16 = vpop.permute.xlu1 %1086 }
  0xbe   : > { %v1085_v11 = vpop.permute.xlu0 %1084 }
  0xbf   : > { %v1090_v14 = vsel %vm1088_vm9, %v1083_v10, %v1085_v11  ;;  %v1091_v18 = vsel %vm1088_vm9, %v1085_v11, %v1087_v16 }
  0xc0   : > { %v1102_v23 = vsel %vm198_vm1, %v1091_v18, 0 }
  0xc1   : > { %v1211_v20 = vpop.permute.xlu1 %1210 }
  0xc2   : > { %v1209_v15 = vpop.permute.xlu0 %1208 }
  0xc3   : > { %1544 = vmatmul.mubr.msk.bf16.vlgmr.msra.gmra.mrb[0].mxu1 %vm194_vm2, %v1457_v9  ;;  %v1217_v26 = vsel %vm1216_vm10, %v1209_v15, %v1211_v20 }
  0xc4   : > { %1463 = vmatmul.mubr.msk.bf16.vlgmr.msra.gmra.mrb[0].mxu0 %vm194_vm2, %v1457_v9  ;;  %1548 = vmatpush3.bf16.msra.mxu1 %v974_v13  ;;  %v1224_v29 = vsel %vm198_vm1, %v1217_v26, 0 }
  0xc5   : > { %977 = vmatpush1.bf16.msra.mxu0 %v968_v12  ;;  %1008 = vmatprep.mubr.bf16.mxu0 %v1697_v3  ;;  %v1215_v25 = vpop.permute.xlu1 %1214 }
  0xc6   : > { %1549 = vmatprep.mubr.msk.bf16.mxu1 %vm1698_vm0, %v1696_v2  ;;  %1478 = vmatprep.subr.msk.bf16.mxu0 %vm198_vm1, %v1090_v14  ;;  %v1213_v21 = vpop.permute.xlu0 %1212 }
  0xc7   : > { %1553 = vmatprep.subr.bf16.mxu1 %v1696_v2  ;;  %v1218_v24 = vsel %vm1216_vm10, %v1211_v20, %v1213_v21  ;;  %v1219_v27 = vsel %vm1216_vm10, %v1213_v21, %v1215_v25 }
  0xc8   : > { %v1230_v30 = vsel %vm198_vm1, %v1219_v27, 0 }
  0xcf   : > { %1550 = vmatmul.mubr.msk.bf16.vlgmr.msra.gmra.mrb[0].mxu1 %vm194_vm2, %v1465_v19 }
  0xd0   : > { %1471 = vmatmul.mubr.msk.bf16.vlgmr.msra.gmra.mrb[0].mxu0 %vm194_vm2, %v1465_v19  ;;  %1554 = vmatpush3.bf16.msra.mxu1 %v1102_v23 }
  0xd1   : > { %1105 = vmatpush1.bf16.msra.mxu0 %v1096_v22  ;;  %1136 = vmatprep.mubr.bf16.mxu0 %v1697_v3 }
  0xd2   : > { %1555 = vmatprep.mubr.msk.bf16.mxu1 %vm1698_vm0, %v1696_v2  ;;  %1486 = vmatprep.subr.msk.bf16.mxu0 %vm198_vm1, %v1218_v24 }
  0xd3   : > { %1559 = vmatprep.subr.bf16.mxu1 %v1696_v2 }
  0xdb   : > { %1556 = vmatmul.mubr.msk.bf16.vlgmr.msra.gmra.mrb[0].mxu1 %vm194_vm2, %v1473_v28 }
  0xdc   : > { %1479 = vmatmul.mubr.msk.bf16.vlgmr.msra.gmra.mrb[0].mxu0 %vm194_vm2, %v1473_v28  ;;  %1560 = vmatpush3.bf16.msra.mxu1 %v1230_v30 }
  0xdd   : > { %1233 = vmatpush1.bf16.msra.mxu0 %v1224_v29  ;;  %1264 = vmatprep.mubr.bf16.mxu0 %v1697_v3 }
  0xde   : > { %1561 = vmatprep.mubr.msk.bf16.mxu1 %vm1698_vm0, %v1696_v2 }
  0xe7   : > { %1562 = vmatmul.mubr.msk.bf16.vlgmr.msra.gmra.mrb[0].mxu1 %vm194_vm2, %v1481_v31 }
  0xe8   : > { %1487 = vmatmul.mubr.msk.bf16.vlgmr.msra.gmra.mrb[0].mxu0 %vm194_vm2, %v1481_v31 }
 0x1ba   : > { %v1307_v33 = vpop.f32.mrb[0].mxu1 }
 0x1bb   : > { %v1266_v32 = vpop.f32.mrb[0].mxu0  ;;  %1324 = vst [vmem:[%s1746_s20 + $0x10] sm:$0xff] %v1307_v33  ;;  %v1563_v35 = vpop.f32.mrb[1].mxu1 }
 0x1bc   : > { %1322 = vst [vmem:[%s1746_s20] sm:$0xff] %v1266_v32  ;;  %v1268_v34 = vpop.f32.mrb[1].mxu0  ;;  %v1310_v3 = vpop.f32.mrb[2].mxu1 }
 0x1bd   : > { %1323 = vst [vmem:[%s1746_s20 + $0x8] sm:$0xff] %v1268_v34  ;;  %v1270_v36 = vpop.f32.mrb[2].mxu0  ;;  %v1564_v38 = vpop.f32.mrb[3].mxu1 }
 0x1be   : > { %v1271_v37 = vpop.f32.mrb[3].mxu0 }
 0x1bf PF: > { %s12_s11 = sadd.s32 1, %s1694_s11   ;;  %s1883_s9 = smov %s1690_s10 }
 0x1c0   : > { %p9_p5 = scmp.ge.s32.totalorder %s12_s11, 4   ;;  %s1884_s10 = smov %s1886_s12 }
 0x1c2   :  { %11 = sbr.rel (!%p9_p5) target bundleno = 2 (0x2), region = 102 }
 0x1c9   :  { %1355 = vsyncmov [#allocation4] }
 0x1cc   :  { %s1356_s23 = vpop.sfrf %1355 }
 0x1cd   :  { %p1491_p6 = scmp.ne.s32.totalorder %s1356_s23, 0 }
 0x1cf   :  { %1360 = shalt.err (%p1491_p6)  }

</bundles_post_ra>
